<compile_context>
chip_gen: v6e
topology: v6e:2x2x1
jax: 0.10.0
libtpu: 0.0.40
codegen_flags: <defaults>
</compile_context>

<pallas_src>
import jax
import jax.numpy as jnp
from jax.experimental import pallas as pl
from jax.experimental.pallas import tpu as pltpu


def mlp_kernel(x_ref, w1t_ref, shift_ref, w2t_ref, o_ref):
    # x_ref:     (C, T)     spatial tile: channels on sublane, pixels on lane
    # w1t_ref:   (Cmid, C)  conv1 weight^T with BN scale folded in (resident)
    # shift_ref: (Cmid, 1)  folded BN shift = beta - mean * scale
    # w2t_ref:   (C, Cmid)  conv2 weight^T (resident)
    # o_ref:     (C, T)
    x = x_ref[...]
    h = jnp.dot(w1t_ref[...], x, preferred_element_type=jnp.float32)
    h = jnp.maximum(h + shift_ref[...], 0.0)            # BN shift + ReLU
    y = jnp.dot(w2t_ref[...], h.astype(w2t_ref.dtype),
                preferred_element_type=jnp.float32)
    o_ref[...] = y.astype(o_ref.dtype)


def mlp_forward(x_nchw, w1, w2, gamma, beta, running_mean, running_var,
                eps=1e-5, max_tile_hw=2048,
                act_vmem_budget=12 * 1024 * 1024):
    """x_nchw: (N, C, H, W). w1: (C, Cmid), w2: (Cmid, C) (in, out layout)."""
    N, C, H, W = x_nchw.shape
    Cmid = w1.shape[1]
    HW = H * W
    itemsize = jnp.dtype(x_nchw.dtype).itemsize

    # ---- Fold BatchNorm (eval mode) in f32; fold the scale into W1. ----
    scale = gamma.astype(jnp.float32) / jnp.sqrt(
        running_var.astype(jnp.float32) + eps)                       # (Cmid,)
    shift = beta.astype(jnp.float32) - running_mean.astype(jnp.float32) * scale
    w1t = (w1.astype(jnp.float32) * scale[None, :]).T                # (Cmid, C)
    w1t = w1t.astype(x_nchw.dtype)
    w2t = jnp.transpose(w2)                                          # (C, Cmid)
    shift2d = shift.reshape(Cmid, 1)                                 # (Cmid, 1)

    # ---- Pick a lane-dense spatial tile that fits the VMEM budget. ----
    # Double-buffered input + output tiles: 4 * C * tile * itemsize bytes.
    tile_cap = act_vmem_budget // (4 * C * itemsize)
    tile_cap = max(128, (tile_cap // 128) * 128)
    hw_rounded = ((HW + 127) // 128) * 128
    tile_hw = max(128, min(max_tile_hw, tile_cap, hw_rounded))
    tile_hw = (tile_hw // 128) * 128
    num_tiles = pl.cdiv(HW, tile_hw)

    # NCHW -> (N, C, HW) is a free reshape (no HBM transpose, no padding pass).
    x = x_nchw.reshape(N, C, HW)

    cost = pl.CostEstimate(
        flops=4 * N * HW * C * Cmid,                     # two matmuls
        transcendentals=0,
        bytes_accessed=2 * N * HW * C * itemsize         # x in + y out
        + (2 * C * Cmid + Cmid) * 4,                     # weights + shift
    )

    out = pl.pallas_call(
        mlp_kernel,
        out_shape=jax.ShapeDtypeStruct((N, C, HW), x_nchw.dtype),
        grid_spec=pltpu.PrefetchScalarGridSpec(
            num_scalar_prefetch=0,
            grid=(N, num_tiles),
            in_specs=[
                pl.BlockSpec((None, C, tile_hw), lambda n, i: (n, 0, i)),  # x
                pl.BlockSpec((Cmid, C), lambda n, i: (0, 0)),   # W1^T * scale
                pl.BlockSpec((Cmid, 1), lambda n, i: (0, 0)),   # BN shift
                pl.BlockSpec((C, Cmid), lambda n, i: (0, 0)),   # W2^T
            ],
            out_specs=pl.BlockSpec((None, C, tile_hw), lambda n, i: (n, 0, i)),
        ),
        compiler_params=pltpu.CompilerParams(
            dimension_semantics=("parallel", "parallel")),
        cost_estimate=cost,
    )(x, w1t, shift2d, w2t)

    return out.reshape(N, C, H, W)


def _reference(x_nchw, w1, w2, gamma, beta, running_mean, running_var,
               eps=1e-5):
    N, C, H, W = x_nchw.shape
    x = jnp.transpose(x_nchw, (0, 2, 3, 1)).reshape(-1, C)
    h = x @ w1
    scale = gamma / jnp.sqrt(running_var + eps)
    shift = beta - running_mean * scale
    h = jnp.maximum(h * scale + shift, 0.0)
    y = h @ w2
    return jnp.transpose(y.reshape(N, H, W, C), (0, 3, 1, 2))


if __name__ == "__main__":
    # Small, deterministic setup: batch=2, dim=32, factor=4, spatial=16.
    N, C, H, W = 2, 32, 16, 16
    factor = 4
    Cmid = C // factor

    key = jax.random.PRNGKey(0)
    kx, k1, k2, kg, kb, km, kv = jax.random.split(key, 7)

    x = jax.random.normal(kx, (N, C, H, W), dtype=jnp.float32)

    # Conv2d weights (out, in, 1, 1) -> matmul layout (in, out).
    w1 = jax.random.normal(k1, (C, Cmid), dtype=jnp.float32) * 0.1
    w2 = jax.random.normal(k2, (Cmid, C), dtype=jnp.float32) * 0.1

    # BatchNorm2d(Cmid) parameters / running stats.
    gamma = 1.0 + 0.1 * jax.random.normal(kg, (Cmid,), dtype=jnp.float32)
    beta = 0.1 * jax.random.normal(kb, (Cmid,), dtype=jnp.float32)
    running_mean = 0.1 * jax.random.normal(km, (Cmid,), dtype=jnp.float32)
    running_var = 1.0 + 0.1 * jax.random.uniform(kv, (Cmid,), dtype=jnp.float32)

    out = mlp_forward(x, w1, w2, gamma, beta, running_mean, running_var)
    out = jax.block_until_ready(out)

    ref = _reference(x, w1, w2, gamma, beta, running_mean, running_var)
    assert out.shape == (N, C, H, W)
    assert jnp.allclose(out, ref, atol=1e-4, rtol=1e-4)

    print("KERNEL_OK")
</pallas_src>

<mosaic_0001>
module attributes {stable_mosaic.version = 11 : i64} {
  func.func @mlp_kernel(%arg0: i32, %arg1: i32, %arg2: memref<1x32x256xf32, #tpu.memory_space<vmem>>, %arg3: memref<8x32xf32, #tpu.memory_space<vmem>>, %arg4: memref<8x1xf32, #tpu.memory_space<vmem>>, %arg5: memref<32x8xf32, #tpu.memory_space<vmem>>, %arg6: memref<1x32x256xf32, #tpu.memory_space<vmem>>) attributes {dimension_semantics = [#tpu.dimension_semantics<parallel>, #tpu.dimension_semantics<parallel>], iteration_bounds = array<i64: 2, 1>, scalar_prefetch = 0 : i64, scratch_operands = 0 : i64, tpu.core_type = #tpu.core_type<tc>, window_params = [{transform_indices = @transform_0, window_bounds = array<i64: 1, 32, 256>}, {pipeline_mode = #tpu.pipeline_mode<synchronous>, transform_indices = @transform_1, window_bounds = array<i64: 8, 32>}, {pipeline_mode = #tpu.pipeline_mode<synchronous>, transform_indices = @transform_2, window_bounds = array<i64: 8, 1>}, {pipeline_mode = #tpu.pipeline_mode<synchronous>, transform_indices = @transform_3, window_bounds = array<i64: 32, 8>}, {transform_indices = @transform_4, window_bounds = array<i64: 1, 32, 256>}]} {
    %c0 = arith.constant 0 : index
    %c0_0 = arith.constant 0 : index
    %c0_1 = arith.constant 0 : index
    %0 = vector.load %arg2[%c0, %c0_0, %c0_1] : memref<1x32x256xf32, #tpu.memory_space<vmem>>, vector<1x32x256xf32>
    %1 = vector.shape_cast %0 : vector<1x32x256xf32> to vector<32x256xf32>
    %c0_2 = arith.constant 0 : index
    %c0_3 = arith.constant 0 : index
    %2 = vector.load %arg3[%c0_2, %c0_3] : memref<8x32xf32, #tpu.memory_space<vmem>>, vector<8x32xf32>
    %cst = arith.constant dense<0.000000e+00> : vector<8x256xf32>
    %3 = tpu.matmul %2, %1, %cst {dimension_numbers = #tpu.dot_dimension_numbers<[1], [0], [0], [1], [0, 0, 1, 1], [], []>} : vector<8x32xf32>, vector<32x256xf32>, vector<8x256xf32> -> vector<8x256xf32>
    %c0_4 = arith.constant 0 : index
    %c0_5 = arith.constant 0 : index
    %4 = vector.load %arg4[%c0_4, %c0_5] : memref<8x1xf32, #tpu.memory_space<vmem>>, vector<8x1xf32>
    %5 = vector.broadcast %4 : vector<8x1xf32> to vector<8x256xf32>
    %6 = arith.addf %3, %5 : vector<8x256xf32>
    %cst_6 = arith.constant 0.000000e+00 : f32
    %7 = vector.broadcast %cst_6 : f32 to vector<8x256xf32>
    %8 = arith.maximumf %6, %7 : vector<8x256xf32>
    %c0_7 = arith.constant 0 : index
    %c0_8 = arith.constant 0 : index
    %9 = vector.load %arg5[%c0_7, %c0_8] : memref<32x8xf32, #tpu.memory_space<vmem>>, vector<32x8xf32>
    %cst_9 = arith.constant dense<0.000000e+00> : vector<32x256xf32>
    %10 = tpu.matmul %9, %8, %cst_9 {dimension_numbers = #tpu.dot_dimension_numbers<[1], [0], [0], [1], [0, 0, 1, 1], [], []>} : vector<32x8xf32>, vector<8x256xf32>, vector<32x256xf32> -> vector<32x256xf32>
    %c0_10 = arith.constant 0 : index
    %c0_11 = arith.constant 0 : index
    %c0_12 = arith.constant 0 : index
    %11 = vector.load %arg6[%c0_10, %c0_11, %c0_12] : memref<1x32x256xf32, #tpu.memory_space<vmem>>, vector<1x32x256xf32>
    %12 = vector.shape_cast %11 : vector<1x32x256xf32> to vector<32x256xf32>
    %13 = vector.shape_cast %10 : vector<32x256xf32> to vector<1x32x256xf32>
    tpu.vector_store %arg6[%c0_10, %c0_11, %c0_12], %13 {strides = array<i32>} : memref<1x32x256xf32, #tpu.memory_space<vmem>>, vector<1x32x256xf32>,
    return
  }
  func.func @transform_0(%arg0: i32, %arg1: i32) -> (i32, i32, i32) {
    %c0_i32 = arith.constant 0 : i32
    %c0_i32_0 = arith.constant 0 : i32
    return %arg0, %c0_i32, %arg1 : i32, i32, i32
  }
  func.func @transform_1(%arg0: i32, %arg1: i32) -> (i32, i32) {
    %c0_i32 = arith.constant 0 : i32
    %c0_i32_0 = arith.constant 0 : i32
    %c0_i32_1 = arith.constant 0 : i32
    return %c0_i32, %c0_i32_0 : i32, i32
  }
  func.func @transform_2(%arg0: i32, %arg1: i32) -> (i32, i32) {
    %c0_i32 = arith.constant 0 : i32
    %c0_i32_0 = arith.constant 0 : i32
    %c0_i32_1 = arith.constant 0 : i32
    return %c0_i32, %c0_i32_0 : i32, i32
  }
  func.func @transform_3(%arg0: i32, %arg1: i32) -> (i32, i32) {
    %c0_i32 = arith.constant 0 : i32
    %c0_i32_0 = arith.constant 0 : i32
    %c0_i32_1 = arith.constant 0 : i32
    return %c0_i32, %c0_i32_0 : i32, i32
  }
  func.func @transform_4(%arg0: i32, %arg1: i32) -> (i32, i32, i32) {
    %c0_i32 = arith.constant 0 : i32
    %c0_i32_0 = arith.constant 0 : i32
    return %arg0, %c0_i32, %arg1 : i32, i32, i32
  }
}

</mosaic_0001>

<bundles_post_ra>
// kernel: tpu_custom_call.1
= control target key start
LH: loop header
LB: loop body
LE: loop exit
PB: predicated region body
PF: predicated region fallthrough
CT: control target
= control target key end

     0   :  { %9 = vsyncpa [#allocation3], 0  ;;  %s947_s0 = inlined_call_operand.hbm [shape: f32[2,32,256], index: 0, kind: input, shape index: {}]   ;;  %s948_s1 = inlined_call_operand.vmem [shape: f32[8,32], index: 1, kind: input, shape index: {}]   ;;  %s949_s2 = inlined_call_operand.vmem [shape: f32[8,1], index: 2, kind: input, shape index: {}]   ;;  %s950_s3 = inlined_call_operand.vmem [shape: f32[32,8], index: 3, kind: input, shape index: {}]   ;;  %s951_s4 = inlined_call_operand.hbm [shape: f32[2,32,256], index: 4, kind: output, shape index: {}]  }
   0x1   :  { %11 = vsyncpa [#allocation3 + $0x1], 0 }
   0x2   :  { %12 = vsyncpa [#allocation4], 0 }
   0x3   :  { %14 = vsyncpa [#allocation4 + $0x1], 0  ;;  %s779_s15 = smov 0   ;;  %s781_s16 = smov 0  }
   0x4   :  { %s783_s17 = smov 0   ;;  %s785_s18 = smov 0  }
   0x5   :  { %s787_s19 = smov 0   ;;  %s789_s20 = smov 0  }
   0x6 LB: > { %s545_s21 = sadd.s32 4294967295, %s744_s20   ;;  %s546_s22 = sadd.s32 4294967294, %s744_s20   ;;  %s744_s20 = sphi %s789_s20, %s20_s20   ;;  %s740_s19 = sphi %s787_s19, %s962_s19   ;;  %s736_s18 = sphi %s785_s18, %s961_s18   ;;  %s732_s17 = sphi %s783_s17, %s960_s17   ;;  %s728_s16 = sphi %s781_s16, %s959_s16   ;;  %s724_s15 = sphi %s779_s15, %s958_s15  }
   0x7   : > { %s32_s23 = sadd.s32 1, %s740_s19  ;;  %s41_s24 = sadd.s32 1, %s732_s17 }
   0x8   : > { %p34_p0 = scmp.ge.s32.totalorder %s32_s23, 2  ;;  %p48_p1 = scmp.ne.s32.totalorder %s732_s17, %s728_s16 }
   0x9   : > { %p49_p2 = scmp.eq.s32.totalorder %s744_s20, 0  ;;  %p54_p3 = scmp.ne.s32.totalorder %s728_s16, %s724_s15 }
   0xa   : > { %s964_s23 = smov (%p34_p0, %s32_s23), 0  ;;  %p55_p5 = scmp.eq.s32.totalorder %s545_s21, 0 }
   0xb   : > { %p820_p4 = por %p49_p2, %p48_p1  ;;  %s36_s26 = ssub.s32 %s740_s19, %s964_s23 }
   0xc   : > { %p143_p6 = scmp.eq.s32.totalorder %s545_s21, 1  ;;  %p39_p7 = scmp.eq.s32.totalorder %s36_s26, 0 }
   0xd   : > { %p826_p8 = por %p55_p5, %p54_p3  ;;  %p149_p10 = scmp.eq.s32.totalorder %s546_s22, 1 }
   0xe   : > { %p830_p9 = por %p143_p6, %p48_p1  ;;  %p579_p13 = scmp.lt.s32.totalorder %s744_s20, 2 }
   0xf   : > { %s835_s29 = scalar_select %p39_p7, %s732_s17, %s41_s24  }
  0x10   : > { %p837_p11 = por %p149_p10, %p54_p3  ;;  %s178_s5 = sand.u32 1, %s732_s17  }
  0x11   : > { %s549_s6 = sshll.u32 %s178_s5, 6  ;;  %s565_s7 = sshll.u32 %s740_s19, 10 }
  0x12   : > { %s190_s10 = scalar_lea.hbm %s947_s0, %s565_s7  ;;  %s182_s11 = scalar_lea.vmem [#allocation2], %s549_s6 }
  0x13   : > { %s191_s12 = sshll.u32 %s182_s11, 4  ;;  %p850_p0 = pnand %p579_p13, %p820_p4  ;;  %s192_s12 = int_to_ptr.vmem [resolvable:$true] %s191_s12 }
  0x14   : > { %p552_p1 = scmp.ge.s32.totalorder %s744_s20, 1  ;;  %s179_s14 = scalar_lea.sflag [#allocation3], %s178_s5 }
  0x15   : > { %p638_p2 = pneg %p850_p0  ;;  %s649_s21 = scalar_lea.vmem %s192_s12, 1024 }
  0x16   : > { %p650_p3 = scmp.ne.s32.totalorder %s192_s12, %s649_s21  ;;  %s746_s22 = smov [#allocation2]  }
  0x17   : > { %s654_s24 = sshll.u32 %s746_s22, 4  ;;  %s655_s24 = int_to_ptr.vmem [resolvable:$false] %s654_s24 }
  0x18   : > { %p652_p5 = pnand %p650_p3, %p638_p2  ;;  %s656_s26 = scalar_lea.vmem %s655_s24, 2048 }
  0x19   : > { %p657_p7 = scmp.lt.s32.totalorder %s192_s12, %s655_s24  ;;  %p658_p10 = scmp.lt.s32.totalorder %s656_s26, %s649_s21 }
  0x1a   : > { %p653_p6 = pneg %p652_p5 }
  0x1b   : > { %p659_p12 = por %p658_p10, %p657_p7 }
  0x1d   : > { %p660_p4 = pnand %p659_p12, %p653_p6 }
  0x1f   : > { %663 = shalt.err (!%p660_p4)
}
  0x20   : > { %s747_s25 = smov 256   ;;  %s748_s5 = smov 16  }
  0x21   : > { %574 = dma.hbm_to_vmem [thread:$0]  (!%p850_p0), %s190_s10, 1024, %s192_s12, %s179_s14, %s747_s25, %s747_s25, %s748_s5  }
  0x22   : > { %p199_p13 = scmp.lt.s32.totalorder %s744_s20, 3 }
  0x24   : > { %p200_p2 = pnand %p552_p1, %p199_p13 }
  0x25   : > { %s863_s6 = sand.u32 (!%p200_p2), 1, %s728_s16  }
  0x26   : > { %203 = sbr.rel (%p200_p2) target bundleno = 476 (0x1dc), region = 36  ;;  %s553_s7 = sshll.u32 (!%p200_p2), %s863_s6, 6 }
  0x27   : > { %s206_s8 = scalar_lea.sflag (!%p200_p2), [#allocation3], %s863_s6  ;;  %s209_s9 = scalar_lea.vmem (!%p200_p2), [#allocation2], %s553_s7 }
  0x2b   : > { %715 = dma.done.wait (%p826_p8), %s206_s8, 1024  }
  0x2c   : > { %717 = vsyncadd (%p826_p8), %s206_s8, 4294966272  ;;  %v749_v0 = vmov 0.0   ;;  %v750_v1 = vmov 0   ;;  %v243_v2 = vld [vmem:[%s209_s9 + $0x38] sm:$0xff]  ;;  %v242_v3 = vld [vmem:[%s209_s9 + $0x30] sm:$0xff]  ;;  %vm251_vm0 = vcmask 261120  }
  0x2d   : > { %319 = vmatprep.mubr.f32.mxu0 %v749_v0  ;;  %635 = vset.pattern.permute.xlu0 %v750_v1  ;;  %v241_v4 = vld [vmem:[%s209_s9 + $0x28] sm:$0xff]  ;;  %v240_v5 = vld [vmem:[%s209_s9 + $0x20] sm:$0xff]  ;;  %v239_v6 = vld [vmem:[%s209_s9 + $0x18] sm:$0xff]  ;;  %vm332_vm1 = vcmask 64512   ;;  %s233_s8 = scalar_lea.vmem [#allocation5], %s553_s7  ;;  %s566_s10 = sshll.u32 %s736_s18, 10 }
  0x2e   : > { %409 = vmatprep.mubr.f32.mxu1 %v749_v0  ;;  %279 = vmatprep.subr.mxu0 %v243_v2  ;;  %v238_v7 = vld [vmem:[%s209_s9 + $0x10] sm:$0xff]  ;;  %v245_v8 = vld [vmem:[%s949_s2] sm:$0xff]  ;;  %v237_v9 = vld [vmem:[%s209_s9 + $0x8] sm:$0xff]  ;;  %s899_s27 = scalar_lea.hbm %s951_s4, %s566_s10  ;;  %s443_s12 = scalar_lea.sflag [#allocation4], %s863_s6 }
  0x2f   : > { %280 = vmatpush1.msra.mxu0 %v242_v3  ;;  %248 = vperm.xlu0 %635, %v245_v8   ;;  %v236_v10 = vld [vmem:[%s209_s9] sm:$0xff]  ;;  %v329_v20 = vld [vmem:[%s950_s3 + $0x8] sm:$0xff]  ;;  %v330_v21 = vld [vmem:[%s950_s3 + $0x10] sm:$0xff]  ;;  %s458_s9 = sshll.u32 %s233_s8, 4  ;;  %s751_s18 = smov [#allocation5]   ;;  %s894_s9 = int_to_ptr.vmem [resolvable:$true] %s458_s9 }
  0x30   : > { %281 = vmatprep.subr.mxu0 %v241_v4  ;;  %v244_v11 = vld [vmem:[%s948_s1] sm:$0xff]  ;;  %v331_v22 = vld [vmem:[%s950_s3 + $0x18] sm:$0xff]  ;;  %s664_s13 = scalar_lea.vmem %s894_s9, 1024  ;;  %s668_s14 = sshll.u32 %s751_s18, 4  ;;  %s669_s14 = int_to_ptr.vmem [resolvable:$false] %s668_s14 }
  0x31   : > { %282 = vmatpush1.msra.mxu0 %v240_v5  ;;  %v328_v19 = vld [vmem:[%s950_s3] sm:$0xff]  ;;  %p665_p8 = scmp.ne.s32.totalorder %s894_s9, %s664_s13  ;;  %s670_s21 = scalar_lea.vmem %s669_s14, 2048 }
  0x32   : > { %283 = vmatprep.subr.mxu0 %v239_v6  ;;  %p671_p1 = scmp.lt.s32.totalorder %s894_s9, %s669_s14  ;;  %p672_p3 = scmp.lt.s32.totalorder %s670_s21, %s664_s13 }
  0x33   : > { %284 = vmatpush1.msra.mxu0 %v238_v7  ;;  %p666_p12 = pnand %p665_p8, %p830_p9 }
  0x34   : > { %285 = vmatprep.subr.mxu0 %v237_v9  ;;  %p673_p5 = por %p672_p3, %p671_p1 }
  0x35   : > { %286 = vmatpush1.msra.mxu0 %v236_v10  ;;  %p667_p0 = pneg %p666_p12 }
  0x36   : > { %555 = vmatmul.mubr.msk.f32.vlgmr.msra.gmra.mxu0 %vm251_vm0, %v244_v11 }
  0x37   : > { %p674_p6 = pnand %p673_p5, %p667_p0 }
  0xaa   : > { %v249_v12 = vpop.permute.xlu0 %248 }
  0xf6   : > { %v321_v13 = vpop.f32.mrf.mxu0 }
  0xf7   : > { %v322_v14 = vadd.f32 %v321_v13, %v249_v12 }
  0xf8   : > { %v323_v15 = vpop.f32.mrf.mxu0 }
  0xf9   : > { %v324_v16 = vadd.f32 %v323_v15, %v249_v12  ;;  %v326_v18 = vmax.f32 %v322_v14, 0.0 }
  0xfb   : > { %v327_v17 = vmax.f32 %v324_v16, 0.0 }
  0xfd   : > { %375 = vmatprep.subr.mxu1 %v327_v17 }
  0xfe   : > { %376 = vmatpush1.msra.mxu1 %v326_v18 }
  0xff   : > { %556 = vmatmul.mubr.msk.f32.vlgmr.msra.gmra.mxu1 %vm332_vm1, %v328_v19 }
 0x100   : > { %415 = vmatprep.mubr.f32.mxu1 %v749_v0 }
 0x103   : > { %557 = vmatmul.mubr.msk.f32.gmra.mxu1 %vm332_vm1, %v329_v20 }
 0x104   : > { %421 = vmatprep.mubr.f32.mxu1 %v749_v0 }
 0x107   : > { %558 = vmatmul.mubr.msk.f32.gmra.mxu1 %vm332_vm1, %v330_v21 }
 0x108   : > { %427 = vmatprep.mubr.f32.mxu1 %v749_v0 }
 0x10b   : > { %559 = vmatmul.mubr.msk.f32.gmra.mxu1 %vm332_vm1, %v331_v22 }
 0x1bf   : > { %v411_v23 = vpop.f32.mrf.mxu1 }
 0x1c0   : > { %434 = vst [vmem:[%s233_s8] sm:$0xff] %v411_v23 }
 0x1c1   : > { %v413_v24 = vpop.f32.mrf.mxu1 }
 0x1c2   : > { %435 = vst [vmem:[%s233_s8 + $0x8] sm:$0xff] %v413_v24 }
 0x1c3   : > { %v417_v25 = vpop.f32.mrf.mxu1 }
 0x1c4   : > { %436 = vst [vmem:[%s233_s8 + $0x10] sm:$0xff] %v417_v25 }
 0x1c5   : > { %v419_v26 = vpop.f32.mrf.mxu1 }
 0x1c6   : > { %437 = vst [vmem:[%s233_s8 + $0x18] sm:$0xff] %v419_v26 }
 0x1c7   : > { %v423_v27 = vpop.f32.mrf.mxu1 }
 0x1c8   : > { %438 = vst [vmem:[%s233_s8 + $0x20] sm:$0xff] %v423_v27 }
 0x1c9   : > { %v425_v28 = vpop.f32.mrf.mxu1 }
 0x1ca   : > { %439 = vst [vmem:[%s233_s8 + $0x28] sm:$0xff] %v425_v28 }
 0x1cb   : > { %v429_v29 = vpop.f32.mrf.mxu1 }
 0x1cc   : > { %440 = vst [vmem:[%s233_s8 + $0x30] sm:$0xff] %v429_v29 }
 0x1cd   : > { %v431_v30 = vpop.f32.mrf.mxu1 }
 0x1ce   : > { %441 = vst [vmem:[%s233_s8 + $0x38] sm:$0xff] %v431_v30 }
 0x1cf   : > { %677 = shalt.err (!%p674_p6)
}
 0x1d0   : > { %s678_s22 = scalar_lea.hbm %s899_s27, 1024  ;;  %s682_s25 = scalar_lea.hbm %s951_s4, 2048 }
 0x1d1   : > { %p679_p7 = scmp.ne.s32.totalorder %s899_s27, %s678_s22  ;;  %p683_p13 = scmp.lt.s32.totalorder %s899_s27, %s951_s4 }
 0x1d2   : > { %p684_p2 = scmp.lt.s32.totalorder %s682_s25, %s678_s22 }
 0x1d3   : > { %p680_p10 = pnand %p679_p7, %p830_p9 }
 0x1d4   : > { %p685_p8 = por %p684_p2, %p683_p13 }
 0x1d5   : > { %p681_p4 = pneg %p680_p10 }
 0x1d7   : > { %p686_p12 = pnand %p685_p8, %p681_p4 }
 0x1d9   : > { %689 = shalt.err (!%p686_p12)
}
 0x1da   : > { %s752_s10 = smov 256   ;;  %s753_s7 = smov 16  }
 0x1db   : > { %569 = dma.vmem_to_hbm [thread:$0]  (%p830_p9), %s894_s9, 1024, %s899_s27, %s443_s12, %s752_s10, %s752_s10, %s753_s7  }
 0x1dc PF: > { %s473_s11 = sand.u32 1, %s724_s15   ;;  %p957_p0 = scmp.ge.s32.totalorder %s744_s20, 2 }
 0x1dd   : > { %s474_s13 = scalar_lea.sflag [#allocation4], %s473_s11 }
 0x1de   : > { %p576_p1 = pnand %p957_p0, %p837_p11 }
 0x1e0   : > { %p577_p3 = pneg %p576_p1 }
 0x1e2   : > { %719 = dma.done.wait (%p577_p3), %s474_s13, 1024  }
 0x1e3   : > { %721 = vsyncadd (%p577_p3), %s474_s13, 4294966272  ;;  %s20_s20 = sadd.s32 1, %s744_s20   ;;  %s958_s15 = smov %s728_s16 }
 0x1e4   : > { %p17_p5 = scmp.ge.s32.totalorder %s20_s20, 4   ;;  %s959_s16 = smov %s732_s17 }
 0x1e5   : > { %s960_s17 = smov %s835_s29  ;;  %s961_s18 = smov %s740_s19 }
 0x1e6   : > { %s962_s19 = smov %s964_s23  ;;  %19 = sbr.rel (!%p17_p5) target bundleno = 6 (0x6), region = 81 }
 0x1eb   :  { %479 = vsyncpa [#allocation3], 1 }
 0x1ec   :  { %481 = vsyncpa [#allocation3 + $0x1], 1 }
 0x1ed   :  { %482 = vsyncpa [#allocation4], 1 }
 0x1ee   :  { %484 = vsyncpa [#allocation4 + $0x1], 1 }

</bundles_post_ra>
